<compile_context>
chip_gen: v5e
topology: v5e:2x2
jax: 0.10.0
libtpu: 0.0.40
codegen_flags: <defaults>
</compile_context>

<pallas_src>
import functools

import jax
import jax.numpy as jnp
from jax.experimental import pallas as pl
from jax.experimental.pallas import tpu as pltpu


def _round_up(v, m):
    return ((v + m - 1) // m) * m


def _vmem_capacity_bytes():
    """Per-core VMEM capacity; conservative fallback if the query is unavailable."""
    try:
        info = pltpu.get_tpu_info()
        cap = getattr(info, "vmem_capacity_bytes", None)
        if cap:
            return int(cap)
    except Exception:
        pass
    return 64 << 20  # v7x per-TensorCore size: safe lower bound everywhere


def mlp_predictor_kernel(alpha_ref, x_ref, w1_ref, b1_ref, w2_ref, b2_ref, o_ref,
                         *, compute_dtype):
    """Fused: h = x @ W1 + b1 ; h = PReLU(h, alpha) ; o = h @ W2 + b2."""
    x = x_ref[...].astype(compute_dtype)                        # per-tile cast (not resident)
    h = jnp.dot(x, w1_ref[...], preferred_element_type=jnp.float32)   # f32 accumulate
    h = h + b1_ref[...]                                          # (TB, H) + (1, H), f32
    a = alpha_ref[0]                                             # shared PReLU parameter
    h = jnp.where(h >= 0.0, h, a * h)                            # PReLU(num_parameters=1)
    o = jnp.dot(h.astype(compute_dtype), w2_ref[...],
                preferred_element_type=jnp.float32)              # (TB, D_out), f32
    o_ref[...] = (o + b2_ref[...]).astype(o_ref.dtype)


def mlp_predictor(x, w1, b1, alpha, w2, b2, *, block_b=None,
                  compute_dtype=jnp.bfloat16):
    """x: (B, D_in) f32. Returns (B, D_out) in x.dtype.

    Feature dims are zero-padded to multiples of 128 only when misaligned (exact math);
    the batch is never padded — the partial last batch block is masked on writeback.
    """
    B, D_in = x.shape
    H = w1.shape[1]
    D_out = w2.shape[1]

    # ---- Feature dims: lane-dense padding only when needed (zero pad -> exact). ----
    D_in_p = _round_up(D_in, 128)
    H_p = _round_up(H, 128)
    D_out_p = _round_up(D_out, 128)

    x_in = x if D_in_p == D_in else jnp.pad(x, ((0, 0), (0, D_in_p - D_in)))
    w1_p = w1 if (D_in_p == D_in and H_p == H) else jnp.pad(
        w1, ((0, D_in_p - D_in), (0, H_p - H)))
    b1_p = b1 if H_p == H else jnp.pad(b1, ((0, 0), (0, H_p - H)))
    w2_p = w2 if (H_p == H and D_out_p == D_out) else jnp.pad(
        w2, ((0, H_p - H), (0, D_out_p - D_out)))
    b2_p = b2 if D_out_p == D_out else jnp.pad(b2, ((0, 0), (0, D_out_p - D_out)))

    # Pre-cast resident weights once (biases stay f32: added to the f32 accumulator).
    w1_c = w1_p.astype(compute_dtype)
    w2_c = w2_p.astype(compute_dtype)

    # ---- Generation-aware VMEM budget & batch tile. ----
    cap = _vmem_capacity_bytes()
    budget = int(cap * 0.8)                       # ~20% headroom for the compiler
    if block_b is None:
        block_b = 512 if cap >= (100 << 20) else 256   # v5e/v6e (128 MiB) vs v7x (64 MiB)

    cdt = jnp.dtype(compute_dtype).itemsize
    xdt = jnp.dtype(x.dtype).itemsize
    f32 = 4

    def footprint(tb):
        return (2 * tb * D_in_p * xdt             # x tile, double-buffered
                + 2 * tb * D_out_p * f32          # out tile, double-buffered
                + D_in_p * H_p * cdt              # W1 resident (single-buffered)
                + H_p * f32                       # b1
                + H_p * D_out_p * cdt             # W2 resident
                + D_out_p * f32                   # b2
                + tb * H_p * f32                  # hidden activation (f32)
                + tb * D_out_p * f32)             # f32 matmul result before store

    TB = max(8, min(_round_up(block_b, 8), _round_up(B, 8)))
    slack = 4 << 20                               # Mosaic internal scratch
    while TB > 8 and footprint(TB) + slack > budget:
        TB = max(8, _round_up(TB // 2, 8))
    # TODO(synk): for hidden sizes where W1+W2 can't stay VMEM-resident even at TB=8
    # (mainly v7x's 64 MiB/TC), add an H-tiled "arbitrary" grid axis with a VMEM f32
    # accumulator for the second matmul instead of fully resident weights.

    n_steps = pl.cdiv(B, TB)
    vmem_limit = int(min(budget, footprint(TB) + slack + (4 << 20)))
    vmem_limit = max(vmem_limit, 16 << 20)

    cost = pl.CostEstimate(
        flops=2 * B * (D_in_p * H_p + H_p * D_out_p),
        transcendentals=0,
        bytes_accessed=(B * D_in_p * xdt                      # x (streamed once)
                        + D_in_p * H_p * cdt + H_p * f32      # W1, b1 (resident: once)
                        + H_p * D_out_p * cdt + D_out_p * f32  # W2, b2 (resident: once)
                        + B * D_out_p * f32),                  # output
    )

    kernel = functools.partial(mlp_predictor_kernel, compute_dtype=compute_dtype)

    def make_call(single_buffer_weights):
        if single_buffer_weights:
            def wspec(shape):
                return pl.BlockSpec(shape, lambda i: (0, 0),
                                    pipeline_mode=pl.Buffered(1))
        else:
            def wspec(shape):
                return pl.BlockSpec(shape, lambda i: (0, 0))
        return pl.pallas_call(
            kernel,
            out_shape=jax.ShapeDtypeStruct((B, D_out_p), x.dtype),
            grid=(n_steps,),
            in_specs=[
                pl.BlockSpec(memory_space=pltpu.SMEM),             # alpha (1,)
                pl.BlockSpec((TB, D_in_p), lambda i: (i, 0)),      # x  (batch-tiled)
                wspec((D_in_p, H_p)),                              # W1 (resident)
                wspec((1, H_p)),                                   # b1 (resident)
                wspec((H_p, D_out_p)),                             # W2 (resident)
                wspec((1, D_out_p)),                               # b2 (resident)
            ],
            out_specs=pl.BlockSpec((TB, D_out_p), lambda i: (i, 0)),  # batch-tiled
            compiler_params=pltpu.CompilerParams(
                dimension_semantics=("parallel",),                 # 2 TCs on v7x
                vmem_limit_bytes=vmem_limit,
            ),
            cost_estimate=cost,
        )

    args = (alpha, x_in, w1_c, b1_p, w2_c, b2_p)
    try:
        # Constant index_map -> one pipeline buffer is enough for resident weights.
        out = make_call(True)(*args)
    except Exception:
        # Fallback for JAX versions without BlockSpec pipeline_mode support.
        out = make_call(False)(*args)

    return out if D_out_p == D_out else out[:, :D_out]


def init_params(key, input_size, output_size, hidden_size):
    """Deterministic init mimicking nn.Linear.reset_parameters (uniform +/- 1/sqrt(fan_in))
    and nn.PReLU(1) default alpha=0.25."""
    k1, k2, k3, k4 = jax.random.split(key, 4)
    bound1 = 1.0 / jnp.sqrt(jnp.float32(input_size))
    w1 = jax.random.uniform(k1, (input_size, hidden_size), jnp.float32, -bound1, bound1)
    b1 = jax.random.uniform(k2, (1, hidden_size), jnp.float32, -bound1, bound1)
    bound2 = 1.0 / jnp.sqrt(jnp.float32(hidden_size))
    w2 = jax.random.uniform(k3, (hidden_size, output_size), jnp.float32, -bound2, bound2)
    b2 = jax.random.uniform(k4, (1, output_size), jnp.float32, -bound2, bound2)
    alpha = jnp.array([0.25], dtype=jnp.float32)     # PReLU(num_parameters=1) default
    return w1, b1, alpha, w2, b2


if __name__ == "__main__":
    # Small shapes consistent with the module's forward: x (batch, input_size).
    # batch=10 exercises the partial (masked) batch block; 32/64/16 exercise the
    # conditional lane-padding path.
    batch, input_size, hidden_size, output_size = 10, 32, 64, 16

    key = jax.random.PRNGKey(0)
    kx, kp = jax.random.split(key)
    x = jax.random.normal(kx, (batch, input_size), dtype=jnp.float32)
    w1, b1, alpha, w2, b2 = init_params(kp, input_size, output_size, hidden_size)

    # Pure-JAX reference (f32 everywhere).
    h_ref = x @ w1 + b1
    h_ref = jnp.where(h_ref >= 0.0, h_ref, alpha[0] * h_ref)
    ref = h_ref @ w2 + b2

    # f32 operand path -> tight tolerance.
    out_f32 = mlp_predictor(x, w1, b1, alpha, w2, b2, compute_dtype=jnp.float32)
    jax.block_until_ready(out_f32)
    assert out_f32.shape == (batch, output_size)
    assert jnp.allclose(out_f32, ref, atol=1e-5, rtol=1e-5)

    # bf16 operand path (default; recommended on v6e/v7x) -> relaxed tolerance.
    out_bf16 = mlp_predictor(x, w1, b1, alpha, w2, b2)
    jax.block_until_ready(out_bf16)
    assert out_bf16.shape == (batch, output_size)
    assert jnp.allclose(out_bf16, ref, atol=5e-2, rtol=5e-2)

    print("KERNEL_OK")
</pallas_src>

<mosaic_0001>
module attributes {stable_mosaic.version = 11 : i64} {
  func.func @mlp_predictor_kernel(%arg0: i32, %arg1: memref<1xf32, #tpu.memory_space<smem>>, %arg2: memref<16x128xf32, #tpu.memory_space<vmem>>, %arg3: memref<128x128xf32, #tpu.memory_space<vmem>>, %arg4: memref<1x128xf32, #tpu.memory_space<vmem>>, %arg5: memref<128x128xf32, #tpu.memory_space<vmem>>, %arg6: memref<1x128xf32, #tpu.memory_space<vmem>>, %arg7: memref<16x128xf32, #tpu.memory_space<vmem>>) attributes {dimension_semantics = [#tpu.dimension_semantics<parallel>], iteration_bounds = array<i64: 1>, scalar_prefetch = 0 : i64, scratch_operands = 0 : i64, tpu.core_type = #tpu.core_type<tc>, window_params = [{transform_indices = @transform_0, window_bounds = array<i64: 1>}, {transform_indices = @transform_1, window_bounds = array<i64: 16, 128>}, {pipeline_mode = #tpu.pipeline_mode<synchronous>, transform_indices = @transform_2, window_bounds = array<i64: 128, 128>}, {pipeline_mode = #tpu.pipeline_mode<synchronous>, transform_indices = @transform_3, window_bounds = array<i64: 1, 128>}, {pipeline_mode = #tpu.pipeline_mode<synchronous>, transform_indices = @transform_4, window_bounds = array<i64: 128, 128>}, {pipeline_mode = #tpu.pipeline_mode<synchronous>, transform_indices = @transform_5, window_bounds = array<i64: 1, 128>}, {transform_indices = @transform_6, window_bounds = array<i64: 16, 128>}]} {
    %c0 = arith.constant 0 : index
    %c0_0 = arith.constant 0 : index
    %0 = vector.load %arg2[%c0, %c0_0] : memref<16x128xf32, #tpu.memory_space<vmem>>, vector<16x128xf32>
    %c0_1 = arith.constant 0 : index
    %c0_2 = arith.constant 0 : index
    %1 = vector.load %arg3[%c0_1, %c0_2] : memref<128x128xf32, #tpu.memory_space<vmem>>, vector<128x128xf32>
    %cst = arith.constant dense<0.000000e+00> : vector<16x128xf32>
    %2 = tpu.matmul %0, %1, %cst {dimension_numbers = #tpu.dot_dimension_numbers<[1], [0], [0], [1], [0, 0, 1, 1], [], []>} : vector<16x128xf32>, vector<128x128xf32>, vector<16x128xf32> -> vector<16x128xf32>
    %c0_3 = arith.constant 0 : index
    %c0_4 = arith.constant 0 : index
    %3 = vector.load %arg4[%c0_3, %c0_4] : memref<1x128xf32, #tpu.memory_space<vmem>>, vector<1x128xf32>
    %4 = vector.broadcast %3 : vector<1x128xf32> to vector<16x128xf32>
    %5 = arith.addf %2, %4 : vector<16x128xf32>
    %c0_5 = arith.constant 0 : index
    %6 = memref.load %arg1[%c0_5] : memref<1xf32, #tpu.memory_space<smem>>
    %cst_6 = arith.constant 0.000000e+00 : f32
    %7 = vector.broadcast %cst_6 : f32 to vector<16x128xf32>
    %8 = arith.cmpf oge, %5, %7 : vector<16x128xf32>
    %9 = vector.broadcast %6 : f32 to vector<16x128xf32>
    %10 = arith.mulf %9, %5 : vector<16x128xf32>
    %11 = arith.select %8, %5, %10 : vector<16x128xi1>, vector<16x128xf32>
    %c0_7 = arith.constant 0 : index
    %c0_8 = arith.constant 0 : index
    %12 = vector.load %arg5[%c0_7, %c0_8] : memref<128x128xf32, #tpu.memory_space<vmem>>, vector<128x128xf32>
    %cst_9 = arith.constant dense<0.000000e+00> : vector<16x128xf32>
    %13 = tpu.matmul %11, %12, %cst_9 {dimension_numbers = #tpu.dot_dimension_numbers<[1], [0], [0], [1], [0, 0, 1, 1], [], []>} : vector<16x128xf32>, vector<128x128xf32>, vector<16x128xf32> -> vector<16x128xf32>
    %c0_10 = arith.constant 0 : index
    %c0_11 = arith.constant 0 : index
    %14 = vector.load %arg6[%c0_10, %c0_11] : memref<1x128xf32, #tpu.memory_space<vmem>>, vector<1x128xf32>
    %15 = vector.broadcast %14 : vector<1x128xf32> to vector<16x128xf32>
    %16 = arith.addf %13, %15 : vector<16x128xf32>
    %c0_12 = arith.constant 0 : index
    %c0_13 = arith.constant 0 : index
    %17 = vector.load %arg7[%c0_12, %c0_13] : memref<16x128xf32, #tpu.memory_space<vmem>>, vector<16x128xf32>
    tpu.vector_store %arg7[%c0_12, %c0_13], %16 {strides = array<i32>} : memref<16x128xf32, #tpu.memory_space<vmem>>, vector<16x128xf32>,
    return
  }
  func.func @transform_0(%arg0: i32) -> i32 {
    %c0_i32 = arith.constant 0 : i32
    %c0_i32_0 = arith.constant 0 : i32
    return %c0_i32 : i32
  }
  func.func @transform_1(%arg0: i32) -> (i32, i32) {
    %c0_i32 = arith.constant 0 : i32
    %c0_i32_0 = arith.constant 0 : i32
    return %arg0, %c0_i32 : i32, i32
  }
  func.func @transform_2(%arg0: i32) -> (i32, i32) {
    %c0_i32 = arith.constant 0 : i32
    %c0_i32_0 = arith.constant 0 : i32
    %c0_i32_1 = arith.constant 0 : i32
    return %c0_i32, %c0_i32_0 : i32, i32
  }
  func.func @transform_3(%arg0: i32) -> (i32, i32) {
    %c0_i32 = arith.constant 0 : i32
    %c0_i32_0 = arith.constant 0 : i32
    %c0_i32_1 = arith.constant 0 : i32
    return %c0_i32, %c0_i32_0 : i32, i32
  }
  func.func @transform_4(%arg0: i32) -> (i32, i32) {
    %c0_i32 = arith.constant 0 : i32
    %c0_i32_0 = arith.constant 0 : i32
    %c0_i32_1 = arith.constant 0 : i32
    return %c0_i32, %c0_i32_0 : i32, i32
  }
  func.func @transform_5(%arg0: i32) -> (i32, i32) {
    %c0_i32 = arith.constant 0 : i32
    %c0_i32_0 = arith.constant 0 : i32
    %c0_i32_1 = arith.constant 0 : i32
    return %c0_i32, %c0_i32_0 : i32, i32
  }
  func.func @transform_6(%arg0: i32) -> (i32, i32) {
    %c0_i32 = arith.constant 0 : i32
    %c0_i32_0 = arith.constant 0 : i32
    return %arg0, %c0_i32 : i32, i32
  }
}

module attributes {stable_mosaic.version = 11 : i64} {
  func.func @mlp_predictor_kernel(%arg0: i32, %arg1: memref<1xf32, #tpu.memory_space<smem>>, %arg2: memref<16x128xf32, #tpu.memory_space<vmem>>, %arg3: memref<128x128xf32, #tpu.memory_space<vmem>>, %arg4: memref<1x128xf32, #tpu.memory_space<vmem>>, %arg5: memref<128x128xf32, #tpu.memory_space<vmem>>, %arg6: memref<1x128xf32, #tpu.memory_space<vmem>>, %arg7: memref<16x128xf32, #tpu.memory_space<vmem>>) attributes {dimension_semantics = [#tpu.dimension_semantics<parallel>], iteration_bounds = array<i64: 1>, scalar_prefetch = 0 : i64, scratch_operands = 0 : i64, tpu.core_type = #tpu.core_type<tc>, window_params = [{transform_indices = @transform_0, window_bounds = array<i64: 1>}, {transform_indices = @transform_1, window_bounds = array<i64: 16, 128>}, {pipeline_mode = #tpu.pipeline_mode<synchronous>, transform_indices = @transform_2, window_bounds = array<i64: 128, 128>}, {pipeline_mode = #tpu.pipeline_mode<synchronous>, transform_indices = @transform_3, window_bounds = array<i64: 1, 128>}, {pipeline_mode = #tpu.pipeline_mode<synchronous>, transform_indices = @transform_4, window_bounds = array<i64: 128, 128>}, {pipeline_mode = #tpu.pipeline_mode<synchronous>, transform_indices = @transform_5, window_bounds = array<i64: 1, 128>}, {transform_indices = @transform_6, window_bounds = array<i64: 16, 128>}]} {
    %c0 = arith.constant 0 : index
    %c0_0 = arith.constant 0 : index
    %0 = vector.load %arg2[%c0, %c0_0] : memref<16x128xf32, #tpu.memory_space<vmem>>, vector<16x128xf32>
    %c0_1 = arith.constant 0 : index
    %c0_2 = arith.constant 0 : index
    %1 = vector.load %arg3[%c0_1, %c0_2] : memref<128x128xf32, #tpu.memory_space<vmem>>, vector<128x128xf32>
    %cst = arith.constant dense<0.000000e+00> : vector<16x128xf32>
    %2 = tpu.matmul %0, %1, %cst {dimension_numbers = #tpu.dot_dimension_numbers<[1], [0], [0], [1], [0, 0, 1, 1], [], []>} : vector<16x128xf32>, vector<128x128xf32>, vector<16x128xf32> -> vector<16x128xf32>
    %c0_3 = arith.constant 0 : index
    %c0_4 = arith.constant 0 : index
    %3 = vector.load %arg4[%c0_3, %c0_4] : memref<1x128xf32, #tpu.memory_space<vmem>>, vector<1x128xf32>
    %4 = vector.broadcast %3 : vector<1x128xf32> to vector<16x128xf32>
    %5 = arith.addf %2, %4 : vector<16x128xf32>
    %c0_5 = arith.constant 0 : index
    %6 = memref.load %arg1[%c0_5] : memref<1xf32, #tpu.memory_space<smem>>
    %cst_6 = arith.constant 0.000000e+00 : f32
    %7 = vector.broadcast %cst_6 : f32 to vector<16x128xf32>
    %8 = arith.cmpf oge, %5, %7 : vector<16x128xf32>
    %9 = vector.broadcast %6 : f32 to vector<16x128xf32>
    %10 = arith.mulf %9, %5 : vector<16x128xf32>
    %11 = arith.select %8, %5, %10 : vector<16x128xi1>, vector<16x128xf32>
    %c0_7 = arith.constant 0 : index
    %c0_8 = arith.constant 0 : index
    %12 = vector.load %arg5[%c0_7, %c0_8] : memref<128x128xf32, #tpu.memory_space<vmem>>, vector<128x128xf32>
    %cst_9 = arith.constant dense<0.000000e+00> : vector<16x128xf32>
    %13 = tpu.matmul %11, %12, %cst_9 {dimension_numbers = #tpu.dot_dimension_numbers<[1], [0], [0], [1], [0, 0, 1, 1], [], []>} : vector<16x128xf32>, vector<128x128xf32>, vector<16x128xf32> -> vector<16x128xf32>
    %c0_10 = arith.constant 0 : index
    %c0_11 = arith.constant 0 : index
    %14 = vector.load %arg6[%c0_10, %c0_11] : memref<1x128xf32, #tpu.memory_space<vmem>>, vector<1x128xf32>
    %15 = vector.broadcast %14 : vector<1x128xf32> to vector<16x128xf32>
    %16 = arith.addf %13, %15 : vector<16x128xf32>
    %c0_12 = arith.constant 0 : index
    %c0_13 = arith.constant 0 : index
    %17 = vector.load %arg7[%c0_12, %c0_13] : memref<16x128xf32, #tpu.memory_space<vmem>>, vector<16x128xf32>
    tpu.vector_store %arg7[%c0_12, %c0_13], %16 {strides = array<i32>} : memref<16x128xf32, #tpu.memory_space<vmem>>, vector<16x128xf32>,
    return
  }
  func.func @transform_0(%arg0: i32) -> i32 {
    %c0_i32 = arith.constant 0 : i32
    %c0_i32_0 = arith.constant 0 : i32
    return %c0_i32 : i32
  }
  func.func @transform_1(%arg0: i32) -> (i32, i32) {
    %c0_i32 = arith.constant 0 : i32
    %c0_i32_0 = arith.constant 0 : i32
    return %arg0, %c0_i32 : i32, i32
  }
  func.func @transform_2(%arg0: i32) -> (i32, i32) {
    %c0_i32 = arith.constant 0 : i32
    %c0_i32_0 = arith.constant 0 : i32
    %c0_i32_1 = arith.constant 0 : i32
    return %c0_i32, %c0_i32_0 : i32, i32
  }
  func.func @transform_3(%arg0: i32) -> (i32, i32) {
    %c0_i32 = arith.constant 0 : i32
    %c0_i32_0 = arith.constant 0 : i32
    %c0_i32_1 = arith.constant 0 : i32
    return %c0_i32, %c0_i32_0 : i32, i32
  }
  func.func @transform_4(%arg0: i32) -> (i32, i32) {
    %c0_i32 = arith.constant 0 : i32
    %c0_i32_0 = arith.constant 0 : i32
    %c0_i32_1 = arith.constant 0 : i32
    return %c0_i32, %c0_i32_0 : i32, i32
  }
  func.func @transform_5(%arg0: i32) -> (i32, i32) {
    %c0_i32 = arith.constant 0 : i32
    %c0_i32_0 = arith.constant 0 : i32
    %c0_i32_1 = arith.constant 0 : i32
    return %c0_i32, %c0_i32_0 : i32, i32
  }
  func.func @transform_6(%arg0: i32) -> (i32, i32) {
    %c0_i32 = arith.constant 0 : i32
    %c0_i32_0 = arith.constant 0 : i32
    return %arg0, %c0_i32 : i32, i32
  }
}

</mosaic_0001>

<bundles_post_ra>
// kernel: tpu_custom_call.1
= control target key start
LH: loop header
LB: loop body
LE: loop exit
PB: predicated region body
PF: predicated region fallthrough
CT: control target
= control target key end

     0   :  { %12 = vsyncpa [#allocation4], 0  ;;  %s406_s0 = inlined_call_operand.<no memory space> [shape: f32[1], index: 0, kind: input, shape index: {}]   ;;  %s407_s1 = inlined_call_operand.hbm [shape: f32[10,128], index: 1, kind: input, shape index: {}]   ;;  %s408_s2 = inlined_call_operand.hbm [shape: f32[128,128], index: 2, kind: input, shape index: {}]   ;;  %s409_s3 = inlined_call_operand.vmem [shape: f32[1,128], index: 3, kind: input, shape index: {}]   ;;  %s410_s4 = inlined_call_operand.hbm [shape: f32[128,128], index: 4, kind: input, shape index: {}]   ;;  %s411_s5 = inlined_call_operand.vmem [shape: f32[1,128], index: 5, kind: input, shape index: {}]   ;;  %s412_s6 = inlined_call_operand.hbm [shape: f32[10,128], index: 6, kind: output, shape index: {}]  }
   0x1   :  { %13 = vsyncpa [#allocation7], 0 }
   0x2   :  { %14 = vsyncpa [#allocation5], 0  ;;  %s34_s23 = sshll.u32 %s408_s2, 4  ;;  %s332_s24 = smov [#allocation6]   ;;  %s35_s23 = int_to_ptr.hbm [resolvable:$true] %s34_s23 }
   0x3   :  { %s36_s25 = sshll.u32 %s332_s24, 4  ;;  %s21_s28 = sshll.u32 %s407_s1, 4  ;;  %s37_s25 = int_to_ptr.vmem [resolvable:$true] %s36_s25  ;;  %s22_s28 = int_to_ptr.hbm [resolvable:$true] %s21_s28 }
   0x4   :  { %s333_s29 = smov 128   ;;  %s334_s30 = smov 8  }
   0x5   :  { %42 = dma.hbm_to_vmem [thread:$0]  %s35_s23, 2048, %s37_s25, [#allocation7], %s333_s29, %s333_s29, %s334_s30  }
   0x6   :  { %s335_s7 = smov [#allocation3]   ;;  %s49_s2 = sshll.u32 %s410_s4, 4  ;;  %s50_s2 = int_to_ptr.hbm [resolvable:$true] %s49_s2 }
   0x7   :  { %s23_s8 = sshll.u32 %s335_s7, 4  ;;  %s336_s1 = smov [#allocation8]   ;;  %s24_s8 = int_to_ptr.vmem [resolvable:$true] %s23_s8 }
   0x8   :  { %29 = dma.hbm_to_vmem [thread:$0]  %s22_s28, 256, %s24_s8, [#allocation4], %s333_s29, %s333_s29, %s334_s30  }
   0x9   :  { %s51_s11 = sshll.u32 %s336_s1, 4  ;;  %s52_s11 = int_to_ptr.vmem [resolvable:$true] %s51_s11 }
   0xa   :  { %57 = dma.hbm_to_vmem [thread:$0]  %s50_s2, 2048, %s52_s11, [#allocation7], %s333_s29, %s333_s29, %s334_s30  }
   0xb   :  { %326 = dma.done.wait [#allocation4], 256  }
   0xc   :  { %327 = vsyncadd [#allocation4], 4294967040 }
   0xd   :  { %328 = dma.done.wait [#allocation7], 4096  }
   0xe   :  { %329 = vsyncadd [#allocation7], 4294963200  ;;  %v89_v0 = vld [vmem:[#allocation6 + $0x78] sm:$0xff]  ;;  %v88_v1 = vld [vmem:[#allocation6 + $0x70] sm:$0xff]  ;;  %v120_v37 = vstv %s406_s0  ;;  %s176_s19 = sshll.u32 %s412_s6, 4  ;;  %s177_s19 = int_to_ptr.hbm [resolvable:$true] %s176_s19 }
   0xf   :  { %190 = vmatpush.msra.mxu2 %v89_v0  ;;  %94 = vmatpush.msra.mxu0 %v89_v0  ;;  %v87_v2 = vld [vmem:[#allocation6 + $0x68] sm:$0xff]  ;;  %v86_v3 = vld [vmem:[#allocation6 + $0x60] sm:$0xff]  ;;  %v85_v4 = vld [vmem:[#allocation6 + $0x58] sm:$0xff] }
  0x10   :  { %v140_v5 = vld [vmem:[#allocation8 + $0x78] sm:$0xff]  ;;  %v139_v6 = vld [vmem:[#allocation8 + $0x70] sm:$0xff]  ;;  %v138_v8 = vld [vmem:[#allocation8 + $0x68] sm:$0xff] }
  0x11   :  { %191 = vmatpush.msra.mxu2 %v88_v1  ;;  %95 = vmatpush.msra.mxu0 %v88_v1  ;;  %v84_v7 = vld [vmem:[#allocation6 + $0x50] sm:$0xff]  ;;  %v83_v9 = vld [vmem:[#allocation6 + $0x48] sm:$0xff]  ;;  %v137_v10 = vld [vmem:[#allocation8 + $0x60] sm:$0xff] }
  0x12   :  { %206 = vmatpush.msra.mxu3 %v140_v5  ;;  %145 = vmatpush.msra.mxu1 %v140_v5  ;;  %v82_v11 = vld [vmem:[#allocation6 + $0x40] sm:$0xff]  ;;  %v136_v12 = vld [vmem:[#allocation8 + $0x58] sm:$0xff]  ;;  %v135_v14 = vld [vmem:[#allocation8 + $0x50] sm:$0xff] }
  0x13   :  { %192 = vmatpush.msra.mxu2 %v87_v2  ;;  %96 = vmatpush.msra.mxu0 %v87_v2  ;;  %v81_v13 = vld [vmem:[#allocation6 + $0x38] sm:$0xff]  ;;  %v80_v15 = vld [vmem:[#allocation6 + $0x30] sm:$0xff]  ;;  %v134_v16 = vld [vmem:[#allocation8 + $0x48] sm:$0xff] }
  0x14   :  { %207 = vmatpush.msra.mxu3 %v139_v6  ;;  %146 = vmatpush.msra.mxu1 %v139_v6  ;;  %v79_v17 = vld [vmem:[#allocation6 + $0x28] sm:$0xff]  ;;  %v133_v18 = vld [vmem:[#allocation8 + $0x40] sm:$0xff]  ;;  %v132_v20 = vld [vmem:[#allocation8 + $0x38] sm:$0xff] }
  0x15   :  { %193 = vmatpush.msra.mxu2 %v86_v3  ;;  %97 = vmatpush.msra.mxu0 %v86_v3  ;;  %v78_v19 = vld [vmem:[#allocation6 + $0x20] sm:$0xff]  ;;  %v77_v21 = vld [vmem:[#allocation6 + $0x18] sm:$0xff]  ;;  %v131_v22 = vld [vmem:[#allocation8 + $0x30] sm:$0xff] }
  0x16   :  { %208 = vmatpush.msra.mxu3 %v138_v8  ;;  %147 = vmatpush.msra.mxu1 %v138_v8  ;;  %v76_v23 = vld [vmem:[#allocation6 + $0x10] sm:$0xff]  ;;  %v130_v24 = vld [vmem:[#allocation8 + $0x28] sm:$0xff]  ;;  %v129_v26 = vld [vmem:[#allocation8 + $0x20] sm:$0xff] }
  0x17   :  { %194 = vmatpush.msra.mxu2 %v85_v4  ;;  %98 = vmatpush.msra.mxu0 %v85_v4  ;;  %v75_v25 = vld [vmem:[#allocation6 + $0x8] sm:$0xff]  ;;  %v74_v27 = vld [vmem:[#allocation6] sm:$0xff]  ;;  %v73_v28 = vld [vmem:[#allocation3 + $0x8] sm:$0xff] }
  0x18   :  { %209 = vmatpush.msra.mxu3 %v137_v10  ;;  %148 = vmatpush.msra.mxu1 %v137_v10  ;;  %v72_v29 = vld [vmem:[#allocation3] sm:$0xff]  ;;  %v128_v30 = vld [vmem:[#allocation8 + $0x18] sm:$0xff]  ;;  %v126_v32 = vld [vmem:[#allocation8 + $0x8] sm:$0xff] }
  0x19   :  { %195 = vmatpush.msra.mxu2 %v84_v7  ;;  %99 = vmatpush.msra.mxu0 %v84_v7  ;;  %v127_v31 = vld [vmem:[#allocation8 + $0x10] sm:$0xff]  ;;  %v125_v33 = vld [vmem:[#allocation8] sm:$0xff] }
  0x1a   :  { %210 = vmatpush.msra.mxu3 %v136_v12  ;;  %149 = vmatpush.msra.mxu1 %v136_v12  ;;  %v228_v34 = vld [vmem:[%s409_s3] ss:$0 sm:$0xff]  ;;  %s337_s3 = smov [#allocation9]  }
  0x1b   :  { %196 = vmatpush.msra.mxu2 %v83_v9  ;;  %100 = vmatpush.msra.mxu0 %v83_v9  ;;  %v229_v44 = vld [vmem:[%s411_s5] ss:$0 sm:$0xff]  ;;  %s174_s17 = sshll.u32 %s337_s3, 4  ;;  %s175_s17 = int_to_ptr.vmem [resolvable:$true] %s174_s17 }
  0x1c   :  { %211 = vmatpush.msra.mxu3 %v135_v14  ;;  %150 = vmatpush.msra.mxu1 %v135_v14 }
  0x1d   :  { %197 = vmatpush.msra.mxu2 %v82_v11  ;;  %101 = vmatpush.msra.mxu0 %v82_v11 }
  0x1e   :  { %212 = vmatpush.msra.mxu3 %v134_v16  ;;  %151 = vmatpush.msra.mxu1 %v134_v16 }
  0x1f   :  { %198 = vmatpush.msra.mxu2 %v81_v13  ;;  %102 = vmatpush.msra.mxu0 %v81_v13 }
  0x20   :  { %213 = vmatpush.msra.mxu3 %v133_v18  ;;  %152 = vmatpush.msra.mxu1 %v133_v18 }
  0x21   :  { %199 = vmatpush.msra.mxu2 %v80_v15  ;;  %103 = vmatpush.msra.mxu0 %v80_v15 }
  0x22   :  { %214 = vmatpush.msra.mxu3 %v132_v20  ;;  %153 = vmatpush.msra.mxu1 %v132_v20 }
  0x23   :  { %200 = vmatpush.msra.mxu2 %v79_v17  ;;  %104 = vmatpush.msra.mxu0 %v79_v17 }
  0x24   :  { %215 = vmatpush.msra.mxu3 %v131_v22  ;;  %154 = vmatpush.msra.mxu1 %v131_v22 }
  0x25   :  { %201 = vmatpush.msra.mxu2 %v78_v19  ;;  %105 = vmatpush.msra.mxu0 %v78_v19 }
  0x26   :  { %216 = vmatpush.msra.mxu3 %v130_v24  ;;  %155 = vmatpush.msra.mxu1 %v130_v24 }
  0x27   :  { %202 = vmatpush.msra.mxu2 %v77_v21  ;;  %106 = vmatpush.msra.mxu0 %v77_v21 }
  0x28   :  { %217 = vmatpush.msra.mxu3 %v129_v26  ;;  %156 = vmatpush.msra.mxu1 %v129_v26 }
  0x29   :  { %203 = vmatpush.msra.mxu2 %v76_v23  ;;  %107 = vmatpush.msra.mxu0 %v76_v23 }
  0x2a   :  { %218 = vmatpush.msra.mxu3 %v128_v30  ;;  %157 = vmatpush.msra.mxu1 %v128_v30 }
  0x2b   :  { %204 = vmatpush.msra.mxu2 %v75_v25  ;;  %108 = vmatpush.msra.mxu0 %v75_v25 }
  0x2c   :  { %219 = vmatpush.msra.mxu3 %v127_v31  ;;  %158 = vmatpush.msra.mxu1 %v127_v31 }
  0x2d   :  { %205 = vmatpush.msra.mxu2 %v74_v27  ;;  %109 = vmatpush.msra.mxu0 %v74_v27 }
  0x2e   :  { %113 = vmatmul.f32.vlgmr.msra.gmra.mxu2 %v73_v28  ;;  %110 = vmatmul.f32.vlgmr.msra.gmra.mxu0 %v72_v29 }
  0x2f   :  { %220 = vmatpush.msra.mxu3 %v126_v32  ;;  %159 = vmatpush.msra.mxu1 %v126_v32 }
  0x31   :  { %221 = vmatpush.msra.mxu3 %v125_v33  ;;  %160 = vmatpush.msra.mxu1 %v125_v33 }
  0xab   :  { %v111_v35 = vpop.f32.mrf.mxu0 }
  0xac   :  { %v112_v36 = vadd.f32 %v228_v34, %v111_v35 }
  0xae   :  { %vm118_vm0 = vcmp.ge.f32.partialorder %v112_v36, 0.0  ;;  %v121_v38 = vmul.f32 %v120_v37, %v112_v36 }
  0xb0   :  { %v123_v39 = vsel %vm118_vm0, %v112_v36, %v121_v38 }
  0xb1   :  { %v114_v40 = vpop.f32.mrf.mxu2  ;;  %161 = vmatmul.f32.vlgmr.msra.gmra.mxu1 %v123_v39 }
  0xb2   :  { %v115_v41 = vadd.f32 %v228_v34, %v114_v40 }
  0xb4   :  { %vm119_vm1 = vcmp.ge.f32.partialorder %v115_v41, 0.0  ;;  %v122_v42 = vmul.f32 %v120_v37, %v115_v41 }
  0xb6   :  { %v124_v43 = vsel %vm119_vm1, %v115_v41, %v122_v42 }
  0xb7   :  { %164 = vmatmul.f32.vlgmr.msra.gmra.mxu3 %v124_v43 }
 0x12e   :  { %v162_v45 = vpop.f32.mrf.mxu1 }
 0x12f   :  { %v163_v46 = vadd.f32 %v229_v44, %v162_v45 }
 0x131   :  { %168 = vst [vmem:[#allocation9] sm:$0xff] %v163_v46 }
 0x13a   :  { %v165_v47 = vpop.f32.mrf.mxu3 }
 0x13b   :  { %v166_v48 = vadd.f32 %v229_v44, %v165_v47 }
 0x13d   :  { %169 = vst [vmem:[#allocation9 + $0x8] sm:$0xff] %v166_v48 }
 0x13e   :  { %182 = dma.vmem_to_hbm [thread:$0]  %s175_s17, 256, %s177_s19, [#allocation5], %s333_s29, %s333_s29, %s334_s30  }
 0x13f   :  { %330 = dma.done.wait [#allocation5], 256  }
 0x140   :  { %331 = vsyncadd [#allocation5], 4294967040 }
 0x141   :  { %187 = vsyncpa [#allocation4], 1 }
 0x142   :  { %188 = vsyncpa [#allocation7], 1 }
 0x143   :  { %189 = vsyncpa [#allocation5], 1 }

// kernel: tpu_custom_call.1
= control target key start
LH: loop header
LB: loop body
LE: loop exit
PB: predicated region body
PF: predicated region fallthrough
CT: control target
= control target key end

     0   :  { %12 = vsyncpa [#allocation4], 0  ;;  %s406_s0 = inlined_call_operand.<no memory space> [shape: f32[1], index: 0, kind: input, shape index: {}]   ;;  %s407_s1 = inlined_call_operand.hbm [shape: f32[10,128], index: 1, kind: input, shape index: {}]   ;;  %s408_s2 = inlined_call_operand.hbm [shape: f32[128,128], index: 2, kind: input, shape index: {}]   ;;  %s409_s3 = inlined_call_operand.vmem [shape: f32[1,128], index: 3, kind: input, shape index: {}]   ;;  %s410_s4 = inlined_call_operand.hbm [shape: f32[128,128], index: 4, kind: input, shape index: {}]   ;;  %s411_s5 = inlined_call_operand.vmem [shape: f32[1,128], index: 5, kind: input, shape index: {}]   ;;  %s412_s6 = inlined_call_operand.hbm [shape: f32[10,128], index: 6, kind: output, shape index: {}]  }
   0x1   :  { %13 = vsyncpa [#allocation7], 0 }
   0x2   :  { %14 = vsyncpa [#allocation5], 0  ;;  %s34_s23 = sshll.u32 %s408_s2, 4  ;;  %s332_s24 = smov [#allocation6]   ;;  %s35_s23 = int_to_ptr.hbm [resolvable:$true] %s34_s23 }
   0x3   :  { %s36_s25 = sshll.u32 %s332_s24, 4  ;;  %s21_s28 = sshll.u32 %s407_s1, 4  ;;  %s37_s25 = int_to_ptr.vmem [resolvable:$true] %s36_s25  ;;  %s22_s28 = int_to_ptr.hbm [resolvable:$true] %s21_s28 }
   0x4   :  { %s333_s29 = smov 128   ;;  %s334_s30 = smov 8  }
   0x5   :  { %42 = dma.hbm_to_vmem [thread:$0]  %s35_s23, 2048, %s37_s25, [#allocation7], %s333_s29, %s333_s29, %s334_s30  }
   0x6   :  { %s335_s7 = smov [#allocation3]   ;;  %s49_s2 = sshll.u32 %s410_s4, 4  ;;  %s50_s2 = int_to_ptr.hbm [resolvable:$true] %s49_s2 }
   0x7   :  { %s23_s8 = sshll.u32 %s335_s7, 4  ;;  %s336_s1 = smov [#allocation8]   ;;  %s24_s8 = int_to_ptr.vmem [resolvable:$true] %s23_s8 }
   0x8   :  { %29 = dma.hbm_to_vmem [thread:$0]  %s22_s28, 256, %s24_s8, [#allocation4], %s333_s29, %s333_s29, %s334_s30  }
   0x9   :  { %s51_s11 = sshll.u32 %s336_s1, 4  ;;  %s52_s11 = int_to_ptr.vmem [resolvable:$true] %s51_s11 }
   0xa   :  { %57 = dma.hbm_to_vmem [thread:$0]  %s50_s2, 2048, %s52_s11, [#allocation7], %s333_s29, %s333_s29, %s334_s30  }
   0xb   :  { %326 = dma.done.wait [#allocation4], 256  }
   0xc   :  { %327 = vsyncadd [#allocation4], 4294967040 }
   0xd   :  { %328 = dma.done.wait [#allocation7], 4096  }
   0xe   :  { %329 = vsyncadd [#allocation7], 4294963200  ;;  %v89_v0 = vld [vmem:[#allocation6 + $0x78] sm:$0xff]  ;;  %v88_v1 = vld [vmem:[#allocation6 + $0x70] sm:$0xff]  ;;  %v120_v37 = vstv %s406_s0  ;;  %s176_s19 = sshll.u32 %s412_s6, 4  ;;  %s177_s19 = int_to_ptr.hbm [resolvable:$true] %s176_s19 }
   0xf   :  { %190 = vmatpush.msra.mxu2 %v89_v0  ;;  %94 = vmatpush.msra.mxu0 %v89_v0  ;;  %v87_v2 = vld [vmem:[#allocation6 + $0x68] sm:$0xff]  ;;  %v86_v3 = vld [vmem:[#allocation6 + $0x60] sm:$0xff]  ;;  %v85_v4 = vld [vmem:[#allocation6 + $0x58] sm:$0xff] }
  0x10   :  { %v140_v5 = vld [vmem:[#allocation8 + $0x78] sm:$0xff]  ;;  %v139_v6 = vld [vmem:[#allocation8 + $0x70] sm:$0xff]  ;;  %v138_v8 = vld [vmem:[#allocation8 + $0x68] sm:$0xff] }
  0x11   :  { %191 = vmatpush.msra.mxu2 %v88_v1  ;;  %95 = vmatpush.msra.mxu0 %v88_v1  ;;  %v84_v7 = vld [vmem:[#allocation6 + $0x50] sm:$0xff]  ;;  %v83_v9 = vld [vmem:[#allocation6 + $0x48] sm:$0xff]  ;;  %v137_v10 = vld [vmem:[#allocation8 + $0x60] sm:$0xff] }
  0x12   :  { %206 = vmatpush.msra.mxu3 %v140_v5  ;;  %145 = vmatpush.msra.mxu1 %v140_v5  ;;  %v82_v11 = vld [vmem:[#allocation6 + $0x40] sm:$0xff]  ;;  %v136_v12 = vld [vmem:[#allocation8 + $0x58] sm:$0xff]  ;;  %v135_v14 = vld [vmem:[#allocation8 + $0x50] sm:$0xff] }
  0x13   :  { %192 = vmatpush.msra.mxu2 %v87_v2  ;;  %96 = vmatpush.msra.mxu0 %v87_v2  ;;  %v81_v13 = vld [vmem:[#allocation6 + $0x38] sm:$0xff]  ;;  %v80_v15 = vld [vmem:[#allocation6 + $0x30] sm:$0xff]  ;;  %v134_v16 = vld [vmem:[#allocation8 + $0x48] sm:$0xff] }
  0x14   :  { %207 = vmatpush.msra.mxu3 %v139_v6  ;;  %146 = vmatpush.msra.mxu1 %v139_v6  ;;  %v79_v17 = vld [vmem:[#allocation6 + $0x28] sm:$0xff]  ;;  %v133_v18 = vld [vmem:[#allocation8 + $0x40] sm:$0xff]  ;;  %v132_v20 = vld [vmem:[#allocation8 + $0x38] sm:$0xff] }
  0x15   :  { %193 = vmatpush.msra.mxu2 %v86_v3  ;;  %97 = vmatpush.msra.mxu0 %v86_v3  ;;  %v78_v19 = vld [vmem:[#allocation6 + $0x20] sm:$0xff]  ;;  %v77_v21 = vld [vmem:[#allocation6 + $0x18] sm:$0xff]  ;;  %v131_v22 = vld [vmem:[#allocation8 + $0x30] sm:$0xff] }
  0x16   :  { %208 = vmatpush.msra.mxu3 %v138_v8  ;;  %147 = vmatpush.msra.mxu1 %v138_v8  ;;  %v76_v23 = vld [vmem:[#allocation6 + $0x10] sm:$0xff]  ;;  %v130_v24 = vld [vmem:[#allocation8 + $0x28] sm:$0xff]  ;;  %v129_v26 = vld [vmem:[#allocation8 + $0x20] sm:$0xff] }
  0x17   :  { %194 = vmatpush.msra.mxu2 %v85_v4  ;;  %98 = vmatpush.msra.mxu0 %v85_v4  ;;  %v75_v25 = vld [vmem:[#allocation6 + $0x8] sm:$0xff]  ;;  %v74_v27 = vld [vmem:[#allocation6] sm:$0xff]  ;;  %v73_v28 = vld [vmem:[#allocation3 + $0x8] sm:$0xff] }
  0x18   :  { %209 = vmatpush.msra.mxu3 %v137_v10  ;;  %148 = vmatpush.msra.mxu1 %v137_v10  ;;  %v72_v29 = vld [vmem:[#allocation3] sm:$0xff]  ;;  %v128_v30 = vld [vmem:[#allocation8 + $0x18] sm:$0xff]  ;;  %v126_v32 = vld [vmem:[#allocation8 + $0x8] sm:$0xff] }
  0x19   :  { %195 = vmatpush.msra.mxu2 %v84_v7  ;;  %99 = vmatpush.msra.mxu0 %v84_v7  ;;  %v127_v31 = vld [vmem:[#allocation8 + $0x10] sm:$0xff]  ;;  %v125_v33 = vld [vmem:[#allocation8] sm:$0xff] }
  0x1a   :  { %210 = vmatpush.msra.mxu3 %v136_v12  ;;  %149 = vmatpush.msra.mxu1 %v136_v12  ;;  %v228_v34 = vld [vmem:[%s409_s3] ss:$0 sm:$0xff]  ;;  %s337_s3 = smov [#allocation9]  }
  0x1b   :  { %196 = vmatpush.msra.mxu2 %v83_v9  ;;  %100 = vmatpush.msra.mxu0 %v83_v9  ;;  %v229_v44 = vld [vmem:[%s411_s5] ss:$0 sm:$0xff]  ;;  %s174_s17 = sshll.u32 %s337_s3, 4  ;;  %s175_s17 = int_to_ptr.vmem [resolvable:$true] %s174_s17 }
  0x1c   :  { %211 = vmatpush.msra.mxu3 %v135_v14  ;;  %150 = vmatpush.msra.mxu1 %v135_v14 }
  0x1d   :  { %197 = vmatpush.msra.mxu2 %v82_v11  ;;  %101 = vmatpush.msra.mxu0 %v82_v11 }
  0x1e   :  { %212 = vmatpush.msra.mxu3 %v134_v16  ;;  %151 = vmatpush.msra.mxu1 %v134_v16 }
  0x1f   :  { %198 = vmatpush.msra.mxu2 %v81_v13  ;;  %102 = vmatpush.msra.mxu0 %v81_v13 }
  0x20   :  { %213 = vmatpush.msra.mxu3 %v133_v18  ;;  %152 = vmatpush.msra.mxu1 %v133_v18 }
  0x21   :  { %199 = vmatpush.msra.mxu2 %v80_v15  ;;  %103 = vmatpush.msra.mxu0 %v80_v15 }
  0x22   :  { %214 = vmatpush.msra.mxu3 %v132_v20  ;;  %153 = vmatpush.msra.mxu1 %v132_v20 }
  0x23   :  { %200 = vmatpush.msra.mxu2 %v79_v17  ;;  %104 = vmatpush.msra.mxu0 %v79_v17 }
  0x24   :  { %215 = vmatpush.msra.mxu3 %v131_v22  ;;  %154 = vmatpush.msra.mxu1 %v131_v22 }
  0x25   :  { %201 = vmatpush.msra.mxu2 %v78_v19  ;;  %105 = vmatpush.msra.mxu0 %v78_v19 }
  0x26   :  { %216 = vmatpush.msra.mxu3 %v130_v24  ;;  %155 = vmatpush.msra.mxu1 %v130_v24 }
  0x27   :  { %202 = vmatpush.msra.mxu2 %v77_v21  ;;  %106 = vmatpush.msra.mxu0 %v77_v21 }
  0x28   :  { %217 = vmatpush.msra.mxu3 %v129_v26  ;;  %156 = vmatpush.msra.mxu1 %v129_v26 }
  0x29   :  { %203 = vmatpush.msra.mxu2 %v76_v23  ;;  %107 = vmatpush.msra.mxu0 %v76_v23 }
  0x2a   :  { %218 = vmatpush.msra.mxu3 %v128_v30  ;;  %157 = vmatpush.msra.mxu1 %v128_v30 }
  0x2b   :  { %204 = vmatpush.msra.mxu2 %v75_v25  ;;  %108 = vmatpush.msra.mxu0 %v75_v25 }
  0x2c   :  { %219 = vmatpush.msra.mxu3 %v127_v31  ;;  %158 = vmatpush.msra.mxu1 %v127_v31 }
  0x2d   :  { %205 = vmatpush.msra.mxu2 %v74_v27  ;;  %109 = vmatpush.msra.mxu0 %v74_v27 }
  0x2e   :  { %113 = vmatmul.f32.vlgmr.msra.gmra.mxu2 %v73_v28  ;;  %110 = vmatmul.f32.vlgmr.msra.gmra.mxu0 %v72_v29 }
  0x2f   :  { %220 = vmatpush.msra.mxu3 %v126_v32  ;;  %159 = vmatpush.msra.mxu1 %v126_v32 }
  0x31   :  { %221 = vmatpush.msra.mxu3 %v125_v33  ;;  %160 = vmatpush.msra.mxu1 %v125_v33 }
  0xab   :  { %v111_v35 = vpop.f32.mrf.mxu0 }
  0xac   :  { %v112_v36 = vadd.f32 %v228_v34, %v111_v35 }
  0xae   :  { %vm118_vm0 = vcmp.ge.f32.partialorder %v112_v36, 0.0  ;;  %v121_v38 = vmul.f32 %v120_v37, %v112_v36 }
  0xb0   :  { %v123_v39 = vsel %vm118_vm0, %v112_v36, %v121_v38 }
  0xb1   :  { %v114_v40 = vpop.f32.mrf.mxu2  ;;  %161 = vmatmul.f32.vlgmr.msra.gmra.mxu1 %v123_v39 }
  0xb2   :  { %v115_v41 = vadd.f32 %v228_v34, %v114_v40 }
  0xb4   :  { %vm119_vm1 = vcmp.ge.f32.partialorder %v115_v41, 0.0  ;;  %v122_v42 = vmul.f32 %v120_v37, %v115_v41 }
  0xb6   :  { %v124_v43 = vsel %vm119_vm1, %v115_v41, %v122_v42 }
  0xb7   :  { %164 = vmatmul.f32.vlgmr.msra.gmra.mxu3 %v124_v43 }
 0x12e   :  { %v162_v45 = vpop.f32.mrf.mxu1 }
 0x12f   :  { %v163_v46 = vadd.f32 %v229_v44, %v162_v45 }
 0x131   :  { %168 = vst [vmem:[#allocation9] sm:$0xff] %v163_v46 }
 0x13a   :  { %v165_v47 = vpop.f32.mrf.mxu3 }
 0x13b   :  { %v166_v48 = vadd.f32 %v229_v44, %v165_v47 }
 0x13d   :  { %169 = vst [vmem:[#allocation9 + $0x8] sm:$0xff] %v166_v48 }
 0x13e   :  { %182 = dma.vmem_to_hbm [thread:$0]  %s175_s17, 256, %s177_s19, [#allocation5], %s333_s29, %s333_s29, %s334_s30  }
 0x13f   :  { %330 = dma.done.wait [#allocation5], 256  }
 0x140   :  { %331 = vsyncadd [#allocation5], 4294967040 }
 0x141   :  { %187 = vsyncpa [#allocation4], 1 }
 0x142   :  { %188 = vsyncpa [#allocation7], 1 }
 0x143   :  { %189 = vsyncpa [#allocation5], 1 }

</bundles_post_ra>
